<compile_context>
chip_gen: v5e
topology: v5e:2x2
jax: 0.10.0
libtpu: 0.0.40
codegen_flags: <defaults>
</compile_context>

<pallas_src>
import functools
import math

import jax
import jax.numpy as jnp
from jax.experimental import pallas as pl
from jax.experimental.pallas import tpu as pltpu


def _round_up(x, m):
    return -(-x // m) * m


def _bucket_from_n(n, *, causal, num_buckets, max_distance):
    """T5 relative-position bucket for n = q - k (i.e. after the `-rel_pos`
    negation in the PyTorch reference).  Mirrors the torch code line-by-line;
    int32 in, int32 out."""
    nb = num_buckets
    ret = jnp.zeros_like(n)
    if not causal:
        nb = nb // 2
        ret = ret + (n < 0).astype(n.dtype) * nb
        n = jnp.abs(n)
    else:
        n = jnp.maximum(n, 0)
    max_exact = nb // 2
    is_small = n < max_exact
    n_safe = jnp.maximum(n, 1).astype(jnp.float32)
    val_if_large = max_exact + (
        jnp.log(n_safe / float(max_exact))
        / math.log(max_distance / max_exact)
        * float(nb - max_exact)
    ).astype(jnp.int32)                      # trunc-toward-zero == torch .long()
    val_if_large = jnp.minimum(val_if_large, nb - 1)
    return ret + jnp.where(is_small, n, val_if_large)


def _toeplitz_fill_kernel(slab_ref, o_ref, *, tm, tn, row_group, slab_w):
    """Expand one precomputed bias slab into a (tm, tn) output tile.

    slab_ref: (1, row_group, slab_w) block with
                slab[p, t] = bias(A + p - t),  A = (tm - RG) + a*tm - b*tn.
    o_ref:    (tm, tn) output tile.  out[g*RG + p, c] = slab[p, col0_g + c]
              with col0_g = RG * (ngroups - 1 - g), so the whole tile is a set
              of lane windows of the slab (Toeplitz expansion).
    """
    slab = slab_ref[0]                                   # (RG, W)
    ngroups = tm // row_group

    # Group row-groups by (col0 mod 128): one XLU lane-roll per residue class,
    # then every slice below is a 128-aligned static lane slice (free vreg
    # selection, no relayout) and every store is a full-width unmasked vst.
    by_residue = {}
    for g in range(ngroups):
        col0 = row_group * (ngroups - 1 - g)
        by_residue.setdefault(col0 % 128, []).append((g, col0))

    for residue, items in sorted(by_residue.items()):
        if residue == 0:
            shifted = slab
        else:
            # shifted[:, u] = slab[:, (u + residue) % slab_w]
            shifted = pltpu.roll(slab, shift=slab_w - residue, axis=1)
        for g, col0 in items:
            start = col0 - residue                       # multiple of 128, >= 0
            o_ref[g * row_group:(g + 1) * row_group, :] = (
                shifted[:, start:start + tn])


def _choose_tile(dim, max_tile, mult):
    """Pick a tile size (multiple of `mult`, <= max_tile) and the padded dim it
    divides.  Prefers minimal total padding, then the largest tile (fewest grid
    steps / widest lane-dense stores); uses the full padded dim when it fits."""
    padded0 = _round_up(dim, mult)
    if padded0 <= max_tile:
        return padded0, padded0
    best_t, best_pad = mult, padded0
    t = max_tile - (max_tile % mult)
    while t >= mult:
        pad = _round_up(dim, t)
        if pad < best_pad or (pad == best_pad and t > best_t):
            best_t, best_pad = t, pad
        t -= mult
    return best_t, best_pad


def t5_relative_position_bias(x, emb_weight, *, scale, causal=False,
                              num_buckets=32, max_distance=128,
                              out_dtype=jnp.float32):
    """Pallas equivalent of T5RelativePositionBias.forward(x).

    x:          any array whose last two dims are (i, j) (only the shape is used)
    emb_weight: (num_buckets, 1) float32 -- nn.Embedding(num_buckets, 1) weight
    returns:    (i, j) bias of dtype `out_dtype` (float32 default; bf16 halves
                HBM store traffic when the consumer accepts it)
    """
    i, j = x.shape[-2], x.shape[-1]
    emb_scaled = emb_weight.reshape(num_buckets).astype(jnp.float32) * scale

    # Row-group = native sublane tile of the output dtype (8 f32 / 16 bf16).
    row_group = {4: 8, 2: 16, 1: 32}[jnp.dtype(out_dtype).itemsize]

    tm, i_pad = _choose_tile(i, 512, row_group)
    tn, j_pad = _choose_tile(j, 2048, 128)

    # Keep >=4 output tiles (v7x shards parallel grid axes over 2 TensorCores);
    # split rows first so the stores stay lane-dense.
    while (i_pad // tm) * (j_pad // tn) < 4:
        if tm >= 2 * row_group and (tm // 2) % row_group == 0:
            tm //= 2
        elif tn >= 256 and (tn // 2) % 128 == 0:
            tn //= 2
        else:
            break

    Ga, Gb = i_pad // tm, j_pad // tn
    G = math.gcd(tm, tn)                       # slab window granularity
    W = _round_up(tm + tn, 128)                # slab width (roll-friendly)
    D = (i_pad - tm + j_pad - tn) // G + 1     # number of distinct slabs
    A_min = (tm - row_group) - (j_pad - tn)

    # ---- host-side (plain JAX) precompute of the slab family ---------------
    # slabs[d, p, t] = bias(A_min + d*G + p - t);  tile (a, b) uses
    #   d = a*(tm//G) + (Gb - 1 - b)*(tn//G).
    d_idx = jnp.arange(D, dtype=jnp.int32)[:, None, None]
    p_idx = jnp.arange(row_group, dtype=jnp.int32)[None, :, None]
    t_idx = jnp.arange(W, dtype=jnp.int32)[None, None, :]
    n = A_min + d_idx * G + p_idx - t_idx                # n = q - k
    bucket = _bucket_from_n(n, causal=causal, num_buckets=num_buckets,
                            max_distance=max_distance)
    slabs = emb_scaled[bucket].astype(out_dtype)         # (D, RG, W)

    kernel = functools.partial(_toeplitz_fill_kernel, tm=tm, tn=tn,
                               row_group=row_group, slab_w=W)
    tm_blocks, tn_blocks = tm // G, tn // G

    out = pl.pallas_call(
        kernel,
        grid=(Ga, Gb),
        in_specs=[pl.BlockSpec(
            (1, row_group, W),
            lambda a, b: (a * tm_blocks + (Gb - 1 - b) * tn_blocks, 0, 0))],
        out_specs=pl.BlockSpec((tm, tn), lambda a, b: (a, b)),
        out_shape=jax.ShapeDtypeStruct((i_pad, j_pad), out_dtype),
        compiler_params=pltpu.CompilerParams(
            dimension_semantics=("parallel", "parallel")),
    )(slabs)

    if (i_pad, j_pad) != (i, j):
        out = out[:i, :j]
    return out


def _reference(x, emb_weight, *, scale, causal=False, num_buckets=32,
               max_distance=128):
    """Pure-JAX reference mirroring the PyTorch forward exactly."""
    i, j = x.shape[-2], x.shape[-1]
    q_pos = jnp.arange(i, dtype=jnp.int32)
    k_pos = jnp.arange(j, dtype=jnp.int32)
    rel_pos = k_pos[None, :] - q_pos[:, None]
    bucket = _bucket_from_n(-rel_pos, causal=causal, num_buckets=num_buckets,
                            max_distance=max_distance)
    values = emb_weight[bucket, 0]
    return values * scale


if __name__ == "__main__":
    key = jax.random.PRNGKey(0)
    k_emb, k_x = jax.random.split(key)

    num_buckets = 32
    max_distance = 128
    scale = 0.125

    # nn.Embedding(num_buckets, 1) weight ~ N(0, 1), deterministic init
    emb_weight = jax.random.normal(k_emb, (num_buckets, 1), dtype=jnp.float32)

    def check(shape, *, causal, out_dtype=jnp.float32, tol=1e-6):
        xx = jax.random.normal(k_x, shape, dtype=jnp.float32)
        out = jax.block_until_ready(t5_relative_position_bias(
            xx, emb_weight, scale=scale, causal=causal,
            num_buckets=num_buckets, max_distance=max_distance,
            out_dtype=out_dtype))
        ref = _reference(xx, emb_weight, scale=scale, causal=causal,
                         num_buckets=num_buckets, max_distance=max_distance)
        assert out.shape == shape[-2:], (out.shape, shape)
        assert out.dtype == out_dtype
        assert jnp.allclose(out.astype(jnp.float32), ref, atol=tol, rtol=tol), \
            f"mismatch for shape={shape} causal={causal} dtype={out_dtype}"

    # 1) non-causal, f32, multi-slab / 2-tile grid (only trailing dims matter)
    check((2, 16, 128), causal=False)
    # 2) causal, f32, multi-row-tile grid -- exercises the per-residue lane
    #    rolls and the slab BlockSpec index_map across 4 distinct slabs
    check((512, 384), causal=True)
    # 3) the module's nominal x shape (i=1, j=887) -- pad-and-crop both dims
    check((1, 887), causal=False)
    # 4) bf16 output option (halves HBM store traffic for the consumer)
    check((16, 128), causal=False, out_dtype=jnp.bfloat16, tol=1e-2)

    print("KERNEL_OK")
</pallas_src>

<mosaic_0001>
module attributes {stable_mosaic.version = 11 : i64} {
  func.func @_toeplitz_fill_kernel(%arg0: i32, %arg1: i32, %arg2: memref<1x8x256xf32, #tpu.memory_space<vmem>>, %arg3: memref<8x128xf32, #tpu.memory_space<vmem>>) attributes {dimension_semantics = [#tpu.dimension_semantics<parallel>, #tpu.dimension_semantics<parallel>], iteration_bounds = array<i64: 2, 1>, scalar_prefetch = 0 : i64, scratch_operands = 0 : i64, tpu.core_type = #tpu.core_type<tc>, window_params = [{transform_indices = @transform_0, window_bounds = array<i64: 1, 8, 256>}, {transform_indices = @transform_1, window_bounds = array<i64: 8, 128>}]} {
    %c0 = arith.constant 0 : index
    %c0_0 = arith.constant 0 : index
    %c0_1 = arith.constant 0 : index
    %0 = vector.load %arg2[%c0, %c0_0, %c0_1] : memref<1x8x256xf32, #tpu.memory_space<vmem>>, vector<1x8x256xf32>
    %1 = vector.shape_cast %0 : vector<1x8x256xf32> to vector<8x256xf32>
    %2 = vector.extract_strided_slice %1 {offsets = [0, 0], sizes = [8, 128], strides = [1, 1]} : vector<8x256xf32> to vector<8x128xf32>
    %c0_2 = arith.constant 0 : index
    %c0_3 = arith.constant 0 : index
    %3 = vector.load %arg3[%c0_2, %c0_3] : memref<8x128xf32, #tpu.memory_space<vmem>>, vector<8x128xf32>
    tpu.vector_store %arg3[%c0_2, %c0_3], %2 {strides = array<i32>} : memref<8x128xf32, #tpu.memory_space<vmem>>, vector<8x128xf32>,
    return
  }
  func.func @transform_0(%arg0: i32, %arg1: i32) -> (i32, i32, i32) {
    %c1_i32 = arith.constant 1 : i32
    %0 = arith.muli %arg0, %c1_i32 : i32
    %c0_i32 = arith.constant 0 : i32
    %1 = arith.subi %c0_i32, %arg1 : i32
    %c16_i32 = arith.constant 16 : i32
    %2 = arith.muli %1, %c16_i32 : i32
    %3 = arith.addi %0, %2 : i32
    %c0_i32_0 = arith.constant 0 : i32
    %c0_i32_1 = arith.constant 0 : i32
    %c0_i32_2 = arith.constant 0 : i32
    return %3, %c0_i32_0, %c0_i32_1 : i32, i32, i32
  }
  func.func @transform_1(%arg0: i32, %arg1: i32) -> (i32, i32) {
    %c0_i32 = arith.constant 0 : i32
    return %arg0, %arg1 : i32, i32
  }
}

</mosaic_0001>

<bundles_post_ra>
// kernel: tpu_custom_call.1
= control target key start
LH: loop header
LB: loop body
LE: loop exit
PB: predicated region body
PF: predicated region fallthrough
CT: control target
= control target key end

     0   :  { %6 = vsyncpa [#allocation3], 0  ;;  %s583_s0 = inlined_call_operand.hbm [shape: f32[2,8,256], index: 0, kind: input, shape index: {}]   ;;  %s584_s1 = inlined_call_operand.hbm [shape: f32[16,128], index: 1, kind: output, shape index: {}]  }
   0x1   :  { %8 = vsyncpa [#allocation3 + $0x1], 0 }
   0x2   :  { %9 = vsyncpa [#allocation4], 0 }
   0x3   :  { %11 = vsyncpa [#allocation4 + $0x1], 0  ;;  %s462_s6 = smov 0   ;;  %s464_s7 = smov 0  }
   0x4   :  { %s466_s8 = smov 0   ;;  %s468_s9 = smov 0  }
   0x5   :  { %s470_s10 = smov 0   ;;  %s472_s11 = smov 0  }
   0x6 LB: > { %s261_s12 = sadd.s32 4294967295, %s450_s11   ;;  %s262_s13 = sadd.s32 4294967294, %s450_s11   ;;  %s450_s11 = sphi %s472_s11, %s17_s11   ;;  %s446_s10 = sphi %s470_s10, %s593_s10   ;;  %s442_s9 = sphi %s468_s9, %s592_s9   ;;  %s438_s8 = sphi %s466_s8, %s591_s8   ;;  %s434_s7 = sphi %s464_s7, %s590_s7   ;;  %s430_s6 = sphi %s462_s6, %s589_s6  }
   0x7   : > { %s29_s14 = sadd.s32 1, %s446_s10  ;;  %s42_s15 = sadd.s32 1, %s438_s8 }
   0x8   : > { %p31_p0 = scmp.ge.s32.totalorder %s29_s14, 2  ;;  %p49_p1 = scmp.ne.s32.totalorder %s438_s8, %s434_s7 }
   0x9   : > { %p50_p2 = scmp.eq.s32.totalorder %s450_s11, 0  ;;  %p55_p3 = scmp.ne.s32.totalorder %s434_s7, %s430_s6 }
   0xa   : > { %s595_s14 = smov (%p31_p0, %s29_s14), 0  ;;  %p56_p5 = scmp.eq.s32.totalorder %s261_s12, 0 }
   0xb   : > { %p503_p4 = por %p50_p2, %p49_p1  ;;  %s39_s17 = ssub.s32 %s446_s10, %s595_s14 }
   0xc   : > { %p81_p6 = scmp.eq.s32.totalorder %s261_s12, 1  ;;  %p40_p7 = scmp.eq.s32.totalorder %s39_s17, 0 }
   0xd   : > { %p509_p8 = por %p56_p5, %p55_p3  ;;  %p87_p10 = scmp.eq.s32.totalorder %s262_s13, 1 }
   0xe   : > { %p513_p9 = por %p81_p6, %p49_p1  ;;  %p264_p12 = scmp.ge.s32.totalorder %s450_s11, 2 }
   0xf   : > { %s518_s20 = scalar_select %p40_p7, %s438_s8, %s42_s15  }
  0x10   : > { %p520_p11 = por %p87_p10, %p55_p3  ;;  %p288_p13 = scmp.lt.s32.totalorder %s450_s11, 2 }
  0x11   : > { %s107_s22 = sand.u32 1, %s438_s8   ;;  %s275_s24 = sshll.u32 %s446_s10, 4 }
  0x12   : > { %s265_s23 = sshll.u32 %s107_s22, 4  ;;  %s119_s27 = scalar_lea.hbm %s583_s0, %s275_s24 }
  0x13   : > { %s111_s28 = scalar_lea.vmem [#allocation2], %s265_s23  ;;  %s121_s30 = sshll.u32 %s119_s27, 4  ;;  %s122_s30 = int_to_ptr.hbm [resolvable:$true] %s121_s30 }
  0x14   : > { %s123_s29 = sshll.u32 %s111_s28, 4  ;;  %p281_p0 = pnand %p288_p13, %p503_p4  ;;  %s124_s29 = int_to_ptr.vmem [resolvable:$true] %s123_s29 }
  0x15   : > { %p268_p1 = scmp.ge.s32.totalorder %s450_s11, 1  ;;  %p128_p2 = scmp.lt.s32.totalorder %s450_s11, 3 }
  0x16   : > { %s108_s2 = scalar_lea.sflag [#allocation3], %s107_s22 }
  0x17   : > { %283 = dma.hbm_to_vmem [thread:$0]  (!%p281_p0), %s122_s30, 256, %s124_s29, %s108_s2  }
  0x18   : > { %p129_p3 = pnand %p268_p1, %p128_p2 }
  0x19   : > { %s536_s3 = sand.u32 (!%p129_p3), 1, %s434_s7  }
  0x1a   : > { %132 = sbr.rel (%p129_p3) target bundleno = 47 (0x2f), region = 24  ;;  %s269_s4 = sshll.u32 (!%p129_p3), %s536_s3, 4 }
  0x1b   : > { %s135_s5 = scalar_lea.sflag (!%p129_p3), [#allocation3], %s536_s3  ;;  %s138_s12 = scalar_lea.vmem (!%p129_p3), [#allocation2], %s269_s4 }
  0x1f   : > { %421 = dma.done.wait (%p509_p8), %s135_s5, 256  }
  0x20   : > { %423 = vsyncadd (%p509_p8), %s135_s5, 4294967040  ;;  %s270_s13 = sshll.u32 %s536_s3, 3  ;;  %s272_s15 = sshll.u32 %s442_s9, 3  ;;  %v161_v0 = vld [vmem:[%s138_s12] sm:$0xff] }
  0x21   : > { %s175_s22 = scalar_lea.hbm %s584_s1, %s272_s15  ;;  %s157_s23 = scalar_lea.vmem [#allocation5], %s270_s13 }
  0x22   : > { %s177_s24 = sshll.u32 %s157_s23, 4  ;;  %s179_s25 = sshll.u32 %s175_s22, 4  ;;  %162 = vst [vmem:[%s157_s23] sm:$0xff] %v161_v0  ;;  %s178_s24 = int_to_ptr.vmem [resolvable:$true] %s177_s24  ;;  %s180_s25 = int_to_ptr.hbm [resolvable:$true] %s179_s25 }
  0x23   : > { %s164_s26 = scalar_lea.sflag [#allocation4], %s536_s3  ;;  %s382_s18 = sshra.s32 %s180_s25, 4  ;;  %s383_s18 = int_to_ptr.hbm [resolvable:$true] %s382_s18 }
  0x24   : > { %s384_s27 = scalar_lea.hbm %s383_s18, 8  ;;  %s388_s29 = scalar_lea.hbm %s584_s1, 16 }
  0x25   : > { %p385_p4 = scmp.ne.s32.totalorder %s383_s18, %s384_s27  ;;  %p389_p7 = scmp.lt.s32.totalorder %s383_s18, %s584_s1 }
  0x26   : > { %p390_p8 = scmp.lt.s32.totalorder %s388_s29, %s384_s27 }
  0x27   : > { %p386_p5 = pnand %p385_p4, %p513_p9 }
  0x28   : > { %p391_p10 = por %p390_p8, %p389_p7 }
  0x29   : > { %p387_p6 = pneg %p386_p5 }
  0x2b   : > { %p392_p13 = pnand %p391_p10, %p387_p6 }
  0x2d   : > { %395 = shalt.err (!%p392_p13)
}
  0x2e   : > { %278 = dma.vmem_to_hbm [thread:$0]  (%p513_p9), %s178_s24, 128, %s180_s25, %s164_s26  }
  0x2f PF: > { %s191_s3 = sand.u32 1, %s430_s6   ;;  %p285_p0 = pnand %p264_p12, %p520_p11 }
  0x30   : > { %s192_s4 = scalar_lea.sflag [#allocation4], %s191_s3 }
  0x31   : > { %p286_p1 = pneg %p285_p0 }
  0x33   : > { %425 = dma.done.wait (%p286_p1), %s192_s4, 128  }
  0x34   : > { %427 = vsyncadd (%p286_p1), %s192_s4, 4294967168  ;;  %s17_s11 = sadd.s32 1, %s450_s11   ;;  %s589_s6 = smov %s434_s7 }
  0x35   : > { %p14_p2 = scmp.ge.s32.totalorder %s17_s11, 4   ;;  %s590_s7 = smov %s438_s8 }
  0x36   : > { %s591_s8 = smov %s518_s20  ;;  %s592_s9 = smov %s446_s10 }
  0x37   : > { %s593_s10 = smov %s595_s14  ;;  %16 = sbr.rel (!%p14_p2) target bundleno = 6 (0x6), region = 69 }
  0x3c   :  { %198 = vsyncpa [#allocation3], 1 }
  0x3d   :  { %200 = vsyncpa [#allocation3 + $0x1], 1 }
  0x3e   :  { %201 = vsyncpa [#allocation4], 1 }
  0x3f   :  { %203 = vsyncpa [#allocation4 + $0x1], 1 }

</bundles_post_ra>
